<compile_context>
chip_gen: v7x
topology: tpu7x:2x2x1
jax: 0.10.0
libtpu: 0.0.40
codegen_flags: <defaults>
</compile_context>

<pallas_src>
import functools

import jax
import jax.numpy as jnp
from jax.experimental import pallas as pl
from jax.experimental.pallas import tpu as pltpu

LANE = 128      # vreg lane width
SUBLANE = 8     # f32 sublane height


def _round_up(n, m):
    return ((n + m - 1) // m) * m


# ---------------------------------------------------------------------------
# Single fused kernel: input projection + unrolled recurrence + split decode.
# ---------------------------------------------------------------------------
def fused_rnn_decode_kernel(x_ref, wx_ref, wh_ref, b_ref, wd_ref, bd_ref,
                            h_out_ref, y_out_ref, *, seq_len, bp):
    """x_ref:(S*BP,In) bf16; wx:(In,HP) bf16; wh:(HP,HP) bf16; b:(1,HP) f32;
    wd:(HP,OP) bf16; bd:(1,OP) f32; h_out:((S+1)*BP,HP) f32; y_out:((S+1)*BP,OP) f32."""
    hp = wh_ref.shape[0]

    # (1) Hoisted input projection + bias for ALL timesteps, one bf16 MXU
    #     matmul with f32 accumulate.  proj[t*BP:(t+1)*BP] is tile-aligned.
    proj = (jnp.dot(x_ref[...], wx_ref[...],
                    preferred_element_type=jnp.float32)
            + b_ref[...])                                   # (S*BP, HP) f32

    wh = wh_ref[...]
    wd = wd_ref[...]
    bd = bd_ref[...]

    # (2) Recurrence, fully unrolled (seq_len is a trace-time int); h stays in
    #     vregs.  Per-step critical path: bf16 (BP,HP)@(HP,HP) + f32 tanh.
    h = jnp.zeros((bp, hp), jnp.float32)
    hs = [h]                                                # h0 = zeros
    for t in range(seq_len):
        pre = (jnp.dot(h.astype(jnp.bfloat16), wh,
                       preferred_element_type=jnp.float32)
               + proj[t * bp:(t + 1) * bp, :])
        h = jnp.tanh(pre)
        hs.append(h)

    # (3) h0..h_{S-1} do NOT depend on the last tanh -> their dense store and
    #     decode matmul can overlap the final recurrence step.
    h_head = jnp.concatenate(hs[:-1], axis=0)               # (S*BP, HP) f32
    h_out_ref[pl.ds(0, seq_len * bp), :] = h_head
    y_out_ref[pl.ds(0, seq_len * bp), :] = (
        jnp.dot(h_head.astype(jnp.bfloat16), wd,
                preferred_element_type=jnp.float32) + bd)

    # (4) Final hidden state + its decode: the only true epilogue (BP rows).
    h_last = hs[-1]
    h_out_ref[pl.ds(seq_len * bp, bp), :] = h_last
    y_out_ref[pl.ds(seq_len * bp, bp), :] = (
        jnp.dot(h_last.astype(jnp.bfloat16), wd,
                preferred_element_type=jnp.float32) + bd)


# ---------------------------------------------------------------------------
# One-time parameter packing (PyTorch Linear shapes -> padded bf16 tensors).
# ---------------------------------------------------------------------------
def pack_params(w_step, b_step, w_dec, b_dec, input_size):
    """cat([x,h],1) @ W^T + b == x @ Wx + h @ Wh + b, with Wx/Wh/Wdec zero-
    padded to 128 lanes and cast to bf16 (biases stay f32)."""
    H = w_step.shape[0]
    Out = w_dec.shape[0]
    HP = _round_up(H, LANE)
    OP = _round_up(Out, LANE)
    wx = (jnp.zeros((input_size, HP), jnp.float32)
          .at[:, :H].set(w_step[:, :input_size].T).astype(jnp.bfloat16))
    wh = (jnp.zeros((HP, HP), jnp.float32)
          .at[:H, :H].set(w_step[:, input_size:].T).astype(jnp.bfloat16))
    bb = jnp.zeros((1, HP), jnp.float32).at[:, :H].set(b_step)
    wd = (jnp.zeros((HP, OP), jnp.float32)
          .at[:H, :Out].set(w_dec.T).astype(jnp.bfloat16))
    bd = jnp.zeros((1, OP), jnp.float32).at[:, :Out].set(b_dec)
    return wx, wh, bb, wd, bd


# ---------------------------------------------------------------------------
# Wrapper: padded bf16 params + x in, (H, Y) out (PyTorch layout).
# ---------------------------------------------------------------------------
def rnn_forward_decode(x, wx, wh, bb, wd, bd, *, hidden_size, output_size):
    """x: (S, B, In) f32.  Returns H: (S+1, B, hidden) with H[0]=0, and
    Y = decode(H): (S+1, B, out)."""
    S, B, In = x.shape
    HP = wh.shape[0]
    OP = wd.shape[1]
    BP = _round_up(B, SUBLANE)

    # Pad batch to 8 sublanes so every per-step row group is a full (8,128)
    # tile.  Padded batch rows are independent garbage; sliced off below.
    x_p = (jnp.zeros((S, BP, In), jnp.bfloat16)
           .at[:, :B, :].set(x.astype(jnp.bfloat16)))
    x2 = x_p.reshape(S * BP, In)

    kernel = functools.partial(fused_rnn_decode_kernel, seq_len=S, bp=BP)
    h2, y2 = pl.pallas_call(
        kernel,
        out_shape=(
            jax.ShapeDtypeStruct(((S + 1) * BP, HP), jnp.float32),
            jax.ShapeDtypeStruct(((S + 1) * BP, OP), jnp.float32),
        ),
        in_specs=[pl.BlockSpec(memory_space=pltpu.VMEM)] * 6,
        out_specs=(
            pl.BlockSpec(memory_space=pltpu.VMEM),
            pl.BlockSpec(memory_space=pltpu.VMEM),
        ),
    )(x2, wx, wh, bb, wd, bd)

    H_full = h2.reshape(S + 1, BP, HP)[:, :B, :hidden_size]
    Y_full = y2.reshape(S + 1, BP, OP)[:, :B, :output_size]
    return H_full, Y_full


# ---------------------------------------------------------------------------
# Pure-JAX reference (mirrors the PyTorch module) for the correctness check.
# ---------------------------------------------------------------------------
def rnn_forward_ref(x, w, b):
    S, B, In = x.shape
    Hh = w.shape[0]
    h = jnp.zeros((B, Hh), jnp.float32)
    outs = [h]
    for t in range(S):
        h = jnp.tanh(jnp.concatenate([x[t], h], axis=1) @ w.T + b)
        outs.append(h)
    return jnp.stack(outs, axis=0)


if __name__ == "__main__":
    SEQ, BATCH, INPUT, HIDDEN, OUTPUT = 8, 2, 16, 32, 5

    key = jax.random.PRNGKey(0)
    k1, k2, k3, k4, k5 = jax.random.split(key, 5)

    # Deterministic synthetic parameters (PyTorch Linear shapes).
    w_step = (jax.random.uniform(k1, (HIDDEN, INPUT + HIDDEN), jnp.float32)
              - 0.5) * 0.2                                   # (H, In+H)
    b_step = (jax.random.uniform(k2, (HIDDEN,), jnp.float32) - 0.5) * 0.2
    w_dec = (jax.random.uniform(k3, (OUTPUT, HIDDEN), jnp.float32) - 0.5) * 0.2
    b_dec = (jax.random.uniform(k4, (OUTPUT,), jnp.float32) - 0.5) * 0.2

    x = jax.random.normal(k5, (SEQ, BATCH, INPUT), jnp.float32)

    # Pack weights ONCE (transposes / lane padding / bf16 cast off hot path).
    packed = pack_params(w_step, b_step, w_dec, b_dec, INPUT)

    fwd = jax.jit(functools.partial(rnn_forward_decode,
                                    hidden_size=HIDDEN, output_size=OUTPUT))
    H_out, Y_out = fwd(x, *packed)
    H_out = jax.block_until_ready(H_out)
    Y_out = jax.block_until_ready(Y_out)

    # Correctness check vs pure-JAX f32 reference (forward + decode).
    H_ref = rnn_forward_ref(x, w_step, b_step)
    Y_ref = H_ref @ w_dec.T + b_dec

    assert H_out.shape == (SEQ + 1, BATCH, HIDDEN)
    assert Y_out.shape == (SEQ + 1, BATCH, OUTPUT)
    # Tolerance relaxed for bf16 MXU inputs (f32 accumulation, f32 tanh/bias).
    assert jnp.allclose(H_out, H_ref, atol=3e-2, rtol=3e-2)
    assert jnp.allclose(Y_out, Y_ref, atol=3e-2, rtol=3e-2)

    print("KERNEL_OK")
</pallas_src>

<mosaic_0001>
module attributes {stable_mosaic.version = 11 : i64} {
  func.func @fused_rnn_decode_kernel(%arg0: memref<64x16xbf16, #tpu.memory_space<vmem>>, %arg1: memref<16x128xbf16, #tpu.memory_space<vmem>>, %arg2: memref<128x128xbf16, #tpu.memory_space<vmem>>, %arg3: memref<1x128xf32, #tpu.memory_space<vmem>>, %arg4: memref<128x128xbf16, #tpu.memory_space<vmem>>, %arg5: memref<1x128xf32, #tpu.memory_space<vmem>>, %arg6: memref<72x128xf32, #tpu.memory_space<vmem>>, %arg7: memref<72x128xf32, #tpu.memory_space<vmem>>) attributes {dimension_semantics = [], scalar_prefetch = 0 : i64, scratch_operands = 0 : i64, tpu.core_type = #tpu.core_type<tc>} {
    %c0 = arith.constant 0 : index
    %c0_0 = arith.constant 0 : index
    %0 = vector.load %arg0[%c0, %c0_0] : memref<64x16xbf16, #tpu.memory_space<vmem>>, vector<64x16xbf16>
    %c0_1 = arith.constant 0 : index
    %c0_2 = arith.constant 0 : index
    %1 = vector.load %arg1[%c0_1, %c0_2] : memref<16x128xbf16, #tpu.memory_space<vmem>>, vector<16x128xbf16>
    %cst = arith.constant dense<0.000000e+00> : vector<64x128xf32>
    %2 = tpu.matmul %0, %1, %cst {dimension_numbers = #tpu.dot_dimension_numbers<[1], [0], [0], [1], [0, 0, 1, 1], [], []>} : vector<64x16xbf16>, vector<16x128xbf16>, vector<64x128xf32> -> vector<64x128xf32>
    %c0_3 = arith.constant 0 : index
    %c0_4 = arith.constant 0 : index
    %3 = vector.load %arg3[%c0_3, %c0_4] : memref<1x128xf32, #tpu.memory_space<vmem>>, vector<1x128xf32>
    %4 = vector.broadcast %3 : vector<1x128xf32> to vector<64x128xf32>
    %5 = arith.addf %2, %4 : vector<64x128xf32>
    %c0_5 = arith.constant 0 : index
    %c0_6 = arith.constant 0 : index
    %6 = vector.load %arg2[%c0_5, %c0_6] : memref<128x128xbf16, #tpu.memory_space<vmem>>, vector<128x128xbf16>
    %c0_7 = arith.constant 0 : index
    %c0_8 = arith.constant 0 : index
    %7 = vector.load %arg4[%c0_7, %c0_8] : memref<128x128xbf16, #tpu.memory_space<vmem>>, vector<128x128xbf16>
    %c0_9 = arith.constant 0 : index
    %c0_10 = arith.constant 0 : index
    %8 = vector.load %arg5[%c0_9, %c0_10] : memref<1x128xf32, #tpu.memory_space<vmem>>, vector<1x128xf32>
    %cst_11 = arith.constant 0.000000e+00 : f32
    %9 = vector.broadcast %cst_11 : f32 to vector<8x128xf32>
    %10 = arith.truncf %9 : vector<8x128xf32> to vector<8x128xbf16>
    %cst_12 = arith.constant dense<0.000000e+00> : vector<8x128xf32>
    %11 = tpu.matmul %10, %6, %cst_12 {dimension_numbers = #tpu.dot_dimension_numbers<[1], [0], [0], [1], [0, 0, 1, 1], [], []>} : vector<8x128xbf16>, vector<128x128xbf16>, vector<8x128xf32> -> vector<8x128xf32>
    %12 = vector.extract_strided_slice %5 {offsets = [0, 0], sizes = [8, 128], strides = [1, 1]} : vector<64x128xf32> to vector<8x128xf32>
    %13 = arith.addf %11, %12 : vector<8x128xf32>
    %14 = math.tanh %13 : vector<8x128xf32>
    %15 = arith.truncf %14 : vector<8x128xf32> to vector<8x128xbf16>
    %cst_13 = arith.constant dense<0.000000e+00> : vector<8x128xf32>
    %16 = tpu.matmul %15, %6, %cst_13 {dimension_numbers = #tpu.dot_dimension_numbers<[1], [0], [0], [1], [0, 0, 1, 1], [], []>} : vector<8x128xbf16>, vector<128x128xbf16>, vector<8x128xf32> -> vector<8x128xf32>
    %17 = vector.extract_strided_slice %5 {offsets = [8, 0], sizes = [8, 128], strides = [1, 1]} : vector<64x128xf32> to vector<8x128xf32>
    %18 = arith.addf %16, %17 : vector<8x128xf32>
    %19 = math.tanh %18 : vector<8x128xf32>
    %20 = arith.truncf %19 : vector<8x128xf32> to vector<8x128xbf16>
    %cst_14 = arith.constant dense<0.000000e+00> : vector<8x128xf32>
    %21 = tpu.matmul %20, %6, %cst_14 {dimension_numbers = #tpu.dot_dimension_numbers<[1], [0], [0], [1], [0, 0, 1, 1], [], []>} : vector<8x128xbf16>, vector<128x128xbf16>, vector<8x128xf32> -> vector<8x128xf32>
    %22 = vector.extract_strided_slice %5 {offsets = [16, 0], sizes = [8, 128], strides = [1, 1]} : vector<64x128xf32> to vector<8x128xf32>
    %23 = arith.addf %21, %22 : vector<8x128xf32>
    %24 = math.tanh %23 : vector<8x128xf32>
    %25 = arith.truncf %24 : vector<8x128xf32> to vector<8x128xbf16>
    %cst_15 = arith.constant dense<0.000000e+00> : vector<8x128xf32>
    %26 = tpu.matmul %25, %6, %cst_15 {dimension_numbers = #tpu.dot_dimension_numbers<[1], [0], [0], [1], [0, 0, 1, 1], [], []>} : vector<8x128xbf16>, vector<128x128xbf16>, vector<8x128xf32> -> vector<8x128xf32>
    %27 = vector.extract_strided_slice %5 {offsets = [24, 0], sizes = [8, 128], strides = [1, 1]} : vector<64x128xf32> to vector<8x128xf32>
    %28 = arith.addf %26, %27 : vector<8x128xf32>
    %29 = math.tanh %28 : vector<8x128xf32>
    %30 = arith.truncf %29 : vector<8x128xf32> to vector<8x128xbf16>
    %cst_16 = arith.constant dense<0.000000e+00> : vector<8x128xf32>
    %31 = tpu.matmul %30, %6, %cst_16 {dimension_numbers = #tpu.dot_dimension_numbers<[1], [0], [0], [1], [0, 0, 1, 1], [], []>} : vector<8x128xbf16>, vector<128x128xbf16>, vector<8x128xf32> -> vector<8x128xf32>
    %32 = vector.extract_strided_slice %5 {offsets = [32, 0], sizes = [8, 128], strides = [1, 1]} : vector<64x128xf32> to vector<8x128xf32>
    %33 = arith.addf %31, %32 : vector<8x128xf32>
    %34 = math.tanh %33 : vector<8x128xf32>
    %35 = arith.truncf %34 : vector<8x128xf32> to vector<8x128xbf16>
    %cst_17 = arith.constant dense<0.000000e+00> : vector<8x128xf32>
    %36 = tpu.matmul %35, %6, %cst_17 {dimension_numbers = #tpu.dot_dimension_numbers<[1], [0], [0], [1], [0, 0, 1, 1], [], []>} : vector<8x128xbf16>, vector<128x128xbf16>, vector<8x128xf32> -> vector<8x128xf32>
    %37 = vector.extract_strided_slice %5 {offsets = [40, 0], sizes = [8, 128], strides = [1, 1]} : vector<64x128xf32> to vector<8x128xf32>
    %38 = arith.addf %36, %37 : vector<8x128xf32>
    %39 = math.tanh %38 : vector<8x128xf32>
    %40 = arith.truncf %39 : vector<8x128xf32> to vector<8x128xbf16>
    %cst_18 = arith.constant dense<0.000000e+00> : vector<8x128xf32>
    %41 = tpu.matmul %40, %6, %cst_18 {dimension_numbers = #tpu.dot_dimension_numbers<[1], [0], [0], [1], [0, 0, 1, 1], [], []>} : vector<8x128xbf16>, vector<128x128xbf16>, vector<8x128xf32> -> vector<8x128xf32>
    %42 = vector.extract_strided_slice %5 {offsets = [48, 0], sizes = [8, 128], strides = [1, 1]} : vector<64x128xf32> to vector<8x128xf32>
    %43 = arith.addf %41, %42 : vector<8x128xf32>
    %44 = math.tanh %43 : vector<8x128xf32>
    %45 = arith.truncf %44 : vector<8x128xf32> to vector<8x128xbf16>
    %cst_19 = arith.constant dense<0.000000e+00> : vector<8x128xf32>
    %46 = tpu.matmul %45, %6, %cst_19 {dimension_numbers = #tpu.dot_dimension_numbers<[1], [0], [0], [1], [0, 0, 1, 1], [], []>} : vector<8x128xbf16>, vector<128x128xbf16>, vector<8x128xf32> -> vector<8x128xf32>
    %47 = vector.extract_strided_slice %5 {offsets = [56, 0], sizes = [8, 128], strides = [1, 1]} : vector<64x128xf32> to vector<8x128xf32>
    %48 = arith.addf %46, %47 : vector<8x128xf32>
    %49 = math.tanh %48 : vector<8x128xf32>
    %50 = tpu.concatenate %9, %14, %19, %24, %29, %34, %39, %44 in 0 : vector<8x128xf32>, vector<8x128xf32>, vector<8x128xf32>, vector<8x128xf32>, vector<8x128xf32>, vector<8x128xf32>, vector<8x128xf32>, vector<8x128xf32> -> vector<64x128xf32>
    %c0_20 = arith.constant 0 : index
    %c0_21 = arith.constant 0 : index
    %51 = vector.load %arg6[%c0_20, %c0_21] : memref<72x128xf32, #tpu.memory_space<vmem>>, vector<64x128xf32>
    tpu.vector_store %arg6[%c0_20, %c0_21], %50 {strides = array<i32>} : memref<72x128xf32, #tpu.memory_space<vmem>>, vector<64x128xf32>,
    %52 = arith.truncf %50 : vector<64x128xf32> to vector<64x128xbf16>
    %cst_22 = arith.constant dense<0.000000e+00> : vector<64x128xf32>
    %53 = tpu.matmul %52, %7, %cst_22 {dimension_numbers = #tpu.dot_dimension_numbers<[1], [0], [0], [1], [0, 0, 1, 1], [], []>} : vector<64x128xbf16>, vector<128x128xbf16>, vector<64x128xf32> -> vector<64x128xf32>
    %54 = vector.broadcast %8 : vector<1x128xf32> to vector<64x128xf32>
    %55 = arith.addf %53, %54 : vector<64x128xf32>
    %c0_23 = arith.constant 0 : index
    %c0_24 = arith.constant 0 : index
    %56 = vector.load %arg7[%c0_23, %c0_24] : memref<72x128xf32, #tpu.memory_space<vmem>>, vector<64x128xf32>
    tpu.vector_store %arg7[%c0_23, %c0_24], %55 {strides = array<i32>} : memref<72x128xf32, #tpu.memory_space<vmem>>, vector<64x128xf32>,
    %c64 = arith.constant 64 : index
    %c0_25 = arith.constant 0 : index
    %57 = vector.load %arg6[%c64, %c0_25] : memref<72x128xf32, #tpu.memory_space<vmem>>, vector<8x128xf32>
    tpu.vector_store %arg6[%c64, %c0_25], %49 {strides = array<i32>} : memref<72x128xf32, #tpu.memory_space<vmem>>, vector<8x128xf32>,
    %58 = arith.truncf %49 : vector<8x128xf32> to vector<8x128xbf16>
    %cst_26 = arith.constant dense<0.000000e+00> : vector<8x128xf32>
    %59 = tpu.matmul %58, %7, %cst_26 {dimension_numbers = #tpu.dot_dimension_numbers<[1], [0], [0], [1], [0, 0, 1, 1], [], []>} : vector<8x128xbf16>, vector<128x128xbf16>, vector<8x128xf32> -> vector<8x128xf32>
    %60 = vector.broadcast %8 : vector<1x128xf32> to vector<8x128xf32>
    %61 = arith.addf %59, %60 : vector<8x128xf32>
    %c64_27 = arith.constant 64 : index
    %c0_28 = arith.constant 0 : index
    %62 = vector.load %arg7[%c64_27, %c0_28] : memref<72x128xf32, #tpu.memory_space<vmem>>, vector<8x128xf32>
    tpu.vector_store %arg7[%c64_27, %c0_28], %61 {strides = array<i32>} : memref<72x128xf32, #tpu.memory_space<vmem>>, vector<8x128xf32>,
    return
  }
}

</mosaic_0001>

<bundles_post_ra>
// kernel: rnn_forward_decode.1
= control target key start
LH: loop header
LB: loop body
LE: loop exit
PB: predicated region body
PF: predicated region fallthrough
CT: control target
= control target key end

     0   :  { %13 = vsyncpa [#allocation3], 0  ;;  %s1609_s0 = inlined_call_operand.vmem [shape: bf16[64,16], index: 0, kind: input, shape index: {}]   ;;  %s1610_s1 = inlined_call_operand.hbm [shape: bf16[16,128], index: 1, kind: input, shape index: {}]   ;;  %s1611_s2 = inlined_call_operand.vmem [shape: bf16[128,128], index: 2, kind: input, shape index: {}]   ;;  %s1612_s3 = inlined_call_operand.vmem [shape: f32[1,128], index: 3, kind: input, shape index: {}]   ;;  %s1613_s4 = inlined_call_operand.hbm [shape: bf16[128,128], index: 4, kind: input, shape index: {}]   ;;  %s1614_s5 = inlined_call_operand.vmem [shape: f32[1,128], index: 5, kind: input, shape index: {}]   ;;  %s1615_s6 = inlined_call_operand.vmem [shape: f32[72,128], index: 6, kind: output, shape index: {0}]   ;;  %s1616_s7 = inlined_call_operand.vmem [shape: f32[72,128], index: 7, kind: output, shape index: {1}]  }
   0x1   :  { %14 = vsyncpa [#allocation5], 0  ;;  %s1214_s24 = smov [#allocation2]   ;;  %s1166_s28 = scalar_lea.hbm %s1610_s1, 128 }
   0x2   :  { %s22_s25 = sshll.u32 %s1214_s24, 4  ;;  %p1167_p0 = scmp.ne.s32.totalorder %s1610_s1, %s1166_s28  ;;  %s23_s25 = int_to_ptr.vmem [resolvable:$true] %s22_s25 }
   0x3   :  { %p1170_p1 = scmp.lt.u32.totalorder %s1166_s28, %s1610_s1 }
   0x5   :  { %p1172_p2 = pnand %p1170_p1, %p1167_p0 }
   0x7   :  { %1175 = shalt.err (!%p1172_p2)
}
   0x8   :  { %s1176_s10 = scalar_lea.vmem %s23_s25, 128  ;;  %p1181_p4 = scmp.lt.s32.totalorder %s23_s25, %s23_s25 }
   0x9   :  { %p1177_p3 = scmp.ne.s32.totalorder %s23_s25, %s1176_s10  ;;  %p1182_p5 = scmp.lt.s32.totalorder %s1176_s10, %s1176_s10 }
   0xb   :  { %p1183_p6 = por %p1182_p5, %p1181_p4 }
   0xd   :  { %p1184_p7 = pnand %p1183_p6, %p1177_p3 }
   0xf   :  { %1187 = shalt.err (!%p1184_p7)
}
  0x10   :  { %s1215_s11 = smov 64   ;;  %s1216_s12 = smov 4  }
  0x11   :  { %28 = dma.hbm_to_vmem [thread:$0]  %s1610_s1, 128, %s23_s25, [#allocation3], %s1215_s11, %s1215_s11, %s1216_s12  }
  0x12   :  { %s1217_s15 = smov [#allocation4]   ;;  %s1188_s19 = scalar_lea.hbm %s1613_s4, 1024 }
  0x13   :  { %s38_s16 = sshll.u32 %s1217_s15, 4  ;;  %p1189_p8 = scmp.ne.s32.totalorder %s1613_s4, %s1188_s19  ;;  %s39_s16 = int_to_ptr.vmem [resolvable:$true] %s38_s16 }
  0x14   :  { %p1192_p9 = scmp.lt.u32.totalorder %s1188_s19, %s1613_s4 }
  0x16   :  { %p1194_p10 = pnand %p1192_p9, %p1189_p8 }
  0x18   :  { %1197 = shalt.err (!%p1194_p10)
}
  0x19   :  { %s1198_s24 = scalar_lea.vmem %s39_s16, 1024  ;;  %p1203_p12 = scmp.lt.s32.totalorder %s39_s16, %s39_s16 }
  0x1a   :  { %p1199_p11 = scmp.ne.s32.totalorder %s39_s16, %s1198_s24  ;;  %p1204_p13 = scmp.lt.s32.totalorder %s1198_s24, %s1198_s24 }
  0x1c   :  { %p1205_p0 = por %p1204_p13, %p1203_p12 }
  0x1e   :  { %p1206_p1 = pnand %p1205_p0, %p1199_p11 }
  0x20   :  { %1209 = shalt.err (!%p1206_p1)
}
  0x21   :  { %44 = dma.hbm_to_vmem [thread:$0]  %s1613_s4, 1024, %s39_s16, [#allocation5], %s1215_s11, %s1215_s11, %s1216_s12  }
  0x22   :  { %1210 = dma.done.wait [#allocation3], 128  }
  0x23   :  { %1211 = vsyncadd [#allocation3], 4294967168 }
  0x24   :  { %1212 = dma.done.wait [#allocation5], 1024  }
  0x25   :  { %1213 = vsyncadd [#allocation5], 4294966272  ;;  %v1218_v0 = vmov 0.0   ;;  %vm1219_vm0 = vmmov 0   ;;  %v1295_v1 = vld [vmem:[%s1611_s2] sm:$0xff]   ;;  %v1301_v2 = vld [vmem:[%s1611_s2 + $0x8] sm:$0xff]  }
  0x26   :  { %591 = vst [vmem:[%s1615_s6] sm:$0xff] %v1218_v0  ;;  %918 = vmatprep.subr.bf16.mxu1 %v1218_v0  ;;  %934 = vmatprep.mubr.msk.bf16.mxu1 %vm1219_vm0, %v1218_v0  ;;  %v1307_v3 = vld [vmem:[%s1611_s2 + $0x10] sm:$0xff]   ;;  %v1135_v4 = vld [vmem:[#allocation2] sm:$0xff]   ;;  %vm97_vm1 = vcmask 130048   ;;  %v1138_v6 = vld [vmem:[%s1609_s0 + $0x8] sm:$0xff]   ;;  %v1220_v12 = vmov 0  }
  0x27   :  { %919 = vmatpush3.bf16.msra.mxu1 %v1295_v1  ;;  %v1136_v5 = vld [vmem:[%s1609_s0] sm:$0xff]   ;;  %908 = vmatprep.subr.bf16.mxu0 %v1135_v4  ;;  %v1322_v7 = vld [vmem:[%s1611_s2 + $0x18] sm:$0xff]   ;;  %v1341_v9 = vld [vmem:[%s1611_s2 + $0x28] sm:$0xff]  }
  0x28   :  { %920 = vmatprep.subr.bf16.mxu1 %v1218_v0  ;;  %909 = vmatpush3.bf16.msra.mxu0 %v1135_v4  ;;  %v1329_v8 = vld [vmem:[%s1611_s2 + $0x20] sm:$0xff]   ;;  %v1350_v10 = vld [vmem:[%s1611_s2 + $0x30] sm:$0xff]   ;;  %v1359_v11 = vld [vmem:[%s1611_s2 + $0x38] sm:$0xff]  }
  0x29   :  { %910 = vmatprep.mubr.msk.bf16.mxu0 %vm97_vm1, %v1136_v5  ;;  %938 = vmatprep.subr.bf16.mxu0 %v1218_v0  ;;  %v1140_v13 = vld [vmem:[%s1609_s0 + $0x10] sm:$0xff]   ;;  %v1141_v14 = vld [vmem:[%s1609_s0 + $0x18] sm:$0xff]   ;;  %v1408_v19 = vld [vmem:[%s1612_s3] ss:$0 sm:$0xff] }
  0x2b   :  { %921 = vmatpush3.bf16.msra.mxu1 %v1301_v2  ;;  %911 = vmatmul.mubr.msk.bf16.vlgmr.msra.gmra.mrb[0].mxu0 %vm97_vm1, %v1138_v6 }
  0x2c   :  { %922 = vmatprep.subr.bf16.mxu1 %v1218_v0  ;;  %939 = vmatpush3.bf16.msra.mxu0 %v1295_v1 }
  0x2d   :  { %940 = vmatprep.subr.bf16.mxu0 %v1218_v0  ;;  %914 = vmatprep.mubr.msk.bf16.mxu0 %vm97_vm1, %v1140_v13  ;;  %v1145_v13 = vld [vmem:[#allocation4 + $0x18] sm:$0xff]  }
  0x2f   :  { %923 = vmatpush3.bf16.msra.mxu1 %v1307_v3 }
  0x30   :  { %924 = vmatprep.subr.bf16.mxu1 %v1218_v0  ;;  %941 = vmatpush3.bf16.msra.mxu0 %v1301_v2 }
  0x31   :  { %942 = vmatprep.subr.bf16.mxu0 %v1218_v0 }
  0x33   :  { %925 = vmatpush3.bf16.msra.mxu1 %v1322_v7  ;;  %915 = vmatmul.mubr.msk.bf16.gmra.mrb[4].mxu0 %vm97_vm1, %v1141_v14  ;;  %v1146_v14 = vld [vmem:[#allocation4 + $0x20] sm:$0xff]  }
  0x34   :  { %926 = vmatprep.subr.bf16.mxu1 %v1218_v0  ;;  %943 = vmatpush3.bf16.msra.mxu0 %v1307_v3 }
  0x35   :  { %944 = vmatprep.subr.bf16.mxu0 %v1218_v0  ;;  %954 = vmatprep.mubr.msk.bf16.mxu0 %vm1219_vm0, %v1218_v0 }
  0x37   :  { %927 = vmatpush3.bf16.msra.mxu1 %v1329_v8 }
  0x38   :  { %928 = vmatprep.subr.bf16.mxu1 %v1218_v0  ;;  %945 = vmatpush3.bf16.msra.mxu0 %v1322_v7 }
  0x39   :  { %946 = vmatprep.subr.bf16.mxu0 %v1218_v0 }
  0x3b   :  { %929 = vmatpush3.bf16.msra.mxu1 %v1341_v9 }
  0x3c   :  { %930 = vmatprep.subr.bf16.mxu1 %v1218_v0  ;;  %947 = vmatpush3.bf16.msra.mxu0 %v1329_v8 }
  0x3d   :  { %948 = vmatprep.subr.bf16.mxu0 %v1218_v0 }
  0x3f   :  { %931 = vmatpush3.bf16.msra.mxu1 %v1350_v10 }
  0x40   :  { %932 = vmatprep.subr.bf16.mxu1 %v1218_v0  ;;  %949 = vmatpush3.bf16.msra.mxu0 %v1341_v9 }
  0x41   :  { %950 = vmatprep.subr.bf16.mxu0 %v1218_v0 }
  0x43   :  { %933 = vmatpush3.bf16.msra.mxu1 %v1359_v11 }
  0x44   :  { %958 = vmatprep.subr.bf16.mxu1 %v1218_v0  ;;  %951 = vmatpush3.bf16.msra.mxu0 %v1350_v10 }
  0x45   :  { %952 = vmatprep.subr.bf16.mxu0 %v1218_v0 }
  0x46   :  { %935 = vmatmul.mubr.bf16.vlgmr.msra.gmra.mrb[0].mxu1 %v1220_v12  ;;  %v1144_v12 = vld [vmem:[#allocation4 + $0x10] sm:$0xff]  }
  0x47   :  { %959 = vmatpush3.bf16.msra.mxu1 %v1295_v1  ;;  %974 = vmatprep.mubr.msk.bf16.mxu1 %vm1219_vm0, %v1218_v0 }
  0x48   :  { %960 = vmatprep.subr.bf16.mxu1 %v1218_v0  ;;  %953 = vmatpush3.bf16.msra.mxu0 %v1359_v11 }
  0x49   :  { %978 = vmatprep.subr.bf16.mxu0 %v1218_v0 }
  0x4b   :  { %961 = vmatpush3.bf16.msra.mxu1 %v1301_v2 }
  0x4c   :  { %962 = vmatprep.subr.bf16.mxu1 %v1218_v0 }
  0x4f   :  { %963 = vmatpush3.bf16.msra.mxu1 %v1307_v3 }
  0x50   :  { %964 = vmatprep.subr.bf16.mxu1 %v1218_v0 }
  0x53   :  { %965 = vmatpush3.bf16.msra.mxu1 %v1322_v7 }
  0x54   :  { %966 = vmatprep.subr.bf16.mxu1 %v1218_v0 }
  0x57   :  { %967 = vmatpush3.bf16.msra.mxu1 %v1329_v8 }
  0x58   :  { %968 = vmatprep.subr.bf16.mxu1 %v1218_v0 }
  0x5b   :  { %969 = vmatpush3.bf16.msra.mxu1 %v1341_v9 }
  0x5c   :  { %970 = vmatprep.subr.bf16.mxu1 %v1218_v0 }
  0x5f   :  { %971 = vmatpush3.bf16.msra.mxu1 %v1350_v10 }
  0x60   :  { %972 = vmatprep.subr.bf16.mxu1 %v1218_v0 }
  0x63   :  { %973 = vmatpush3.bf16.msra.mxu1 %v1359_v11 }
  0x64   :  { %998 = vmatprep.subr.bf16.mxu1 %v1218_v0 }
  0xfe   :  { %v1401_v15 = vpop.f32.mrb[0].mxu0 }
  0xff   :  { %v144_v16 = vpop.f32.mrb[1].mxu0  ;;  %v153_v40 = vadd.f32 %v1401_v15, %v1408_v19  ;;  %v1147_v15 = vld [vmem:[#allocation4 + $0x28] sm:$0xff]  }
 0x100   :  { %v1403_v17 = vpop.f32.mrb[2].mxu0  ;;  %v145_v20 = vadd.f32 %v1408_v19, %v144_v16  ;;  %v1148_v16 = vld [vmem:[#allocation4 + $0x30] sm:$0xff]  }
 0x101   :  { %v147_v18 = vpop.f32.mrb[3].mxu0  ;;  %v156_v48 = vadd.f32 %v1403_v17, %v1408_v19  ;;  %v1149_v17 = vld [vmem:[#allocation4 + $0x38] sm:$0xff]  }
 0x102   :  { %v148_v32 = vadd.f32 %v1408_v19, %v147_v18 }
 0x106   :  { %v1437_v28 = vpop.f32.mrb[4].mxu0 }
 0x107   :  { %v1439_v29 = vpop.f32.mrb[5].mxu0 }
 0x108   :  { %v1441_v30 = vpop.f32.mrb[6].mxu0  ;;  %v161_v56 = vadd.f32 %v1408_v19, %v1439_v29 }
 0x109   :  { %v1443_v31 = vpop.f32.mrb[7].mxu0 }
 0x119   :  { %v290_v21 = vpop.f32.mrb[0].mxu1 }
 0x11a   :  { %v291_v22 = vadd.f32 %v290_v21, %v145_v20  ;;  %v936_v23 = vpop.f32.mrb[1].mxu1  ;;  %v169_v21 = vadd.f32 %v1437_v28, %v1408_v19  ;;  %v801_v28 = vld [vmem:[%s1614_s5] ss:$0 sm:$0xff] }
 0x11b   :  { %v293_v24 = vpop.f32.mrb[2].mxu1 }
 0x11c   :  { %1150 = vtanh.f32 %v291_v22  ;;  %v937_v25 = vpop.f32.mrb[3].mxu1 }
 0x126   :  { %v1411_v26 = vpop.eup %1150 }
 0x127   :  { %592 = vst [vmem:[%s1615_s6 + $0x8] sm:$0xff] %v1411_v26  ;;  %v297_v27 = vpack.c.bf16 %v1411_v26, %v1411_v26 }
 0x129   :  { %955 = vmatmul.mubr.bf16.vlgmr.msra.gmra.mrb[8].mxu0 %v297_v27 }
 0x12a   :  { %979 = vmatpush3.bf16.msra.mxu0 %v1295_v1  ;;  %994 = vmatprep.mubr.msk.bf16.mxu0 %vm1219_vm0, %v1218_v0 }
 0x12b   :  { %980 = vmatprep.subr.bf16.mxu0 %v1218_v0 }
 0x12e   :  { %981 = vmatpush3.bf16.msra.mxu0 %v1301_v2 }
 0x12f   :  { %982 = vmatprep.subr.bf16.mxu0 %v1218_v0 }
 0x132   :  { %983 = vmatpush3.bf16.msra.mxu0 %v1307_v3 }
 0x133   :  { %984 = vmatprep.subr.bf16.mxu0 %v1218_v0 }
 0x136   :  { %985 = vmatpush3.bf16.msra.mxu0 %v1322_v7 }
 0x137   :  { %986 = vmatprep.subr.bf16.mxu0 %v1218_v0 }
 0x13a   :  { %987 = vmatpush3.bf16.msra.mxu0 %v1329_v8 }
 0x13b   :  { %988 = vmatprep.subr.bf16.mxu0 %v1218_v0 }
 0x13e   :  { %989 = vmatpush3.bf16.msra.mxu0 %v1341_v9 }
 0x13f   :  { %990 = vmatprep.subr.bf16.mxu0 %v1218_v0 }
 0x142   :  { %991 = vmatpush3.bf16.msra.mxu0 %v1350_v10 }
 0x143   :  { %992 = vmatprep.subr.bf16.mxu0 %v1218_v0 }
 0x146   :  { %993 = vmatpush3.bf16.msra.mxu0 %v1359_v11 }
 0x147   :  { %1018 = vmatprep.subr.bf16.mxu0 %v1218_v0 }
 0x1fc   :  { %v332_v33 = vpop.f32.mrb[8].mxu0 }
 0x1fd   :  { %v333_v34 = vadd.f32 %v332_v33, %v148_v32  ;;  %v956_v35 = vpop.f32.mrb[9].mxu0 }
 0x1fe   :  { %v335_v36 = vpop.f32.mrb[10].mxu0 }
 0x1ff   :  { %1152 = vtanh.f32 %v333_v34  ;;  %v957_v37 = vpop.f32.mrb[11].mxu0 }
 0x209   :  { %v1446_v38 = vpop.eup %1152 }
 0x20a   :  { %593 = vst [vmem:[%s1615_s6 + $0x10] sm:$0xff] %v1446_v38  ;;  %v339_v39 = vpack.c.bf16 %v1446_v38, %v1446_v38 }
 0x20c   :  { %975 = vmatmul.mubr.bf16.vlgmr.msra.gmra.mrb[4].mxu1 %v339_v39 }
 0x20d   :  { %999 = vmatpush3.bf16.msra.mxu1 %v1295_v1  ;;  %1014 = vmatprep.mubr.msk.bf16.mxu1 %vm1219_vm0, %v1218_v0 }
 0x20e   :  { %1000 = vmatprep.subr.bf16.mxu1 %v1218_v0 }
 0x211   :  { %1001 = vmatpush3.bf16.msra.mxu1 %v1301_v2 }
 0x212   :  { %1002 = vmatprep.subr.bf16.mxu1 %v1218_v0 }
 0x215   :  { %1003 = vmatpush3.bf16.msra.mxu1 %v1307_v3 }
 0x216   :  { %1004 = vmatprep.subr.bf16.mxu1 %v1218_v0 }
 0x219   :  { %1005 = vmatpush3.bf16.msra.mxu1 %v1322_v7 }
 0x21a   :  { %1006 = vmatprep.subr.bf16.mxu1 %v1218_v0 }
 0x21d   :  { %1007 = vmatpush3.bf16.msra.mxu1 %v1329_v8 }
 0x21e   :  { %1008 = vmatprep.subr.bf16.mxu1 %v1218_v0 }
 0x221   :  { %1009 = vmatpush3.bf16.msra.mxu1 %v1341_v9 }
 0x222   :  { %1010 = vmatprep.subr.bf16.mxu1 %v1218_v0 }
 0x225   :  { %1011 = vmatpush3.bf16.msra.mxu1 %v1350_v10 }
 0x226   :  { %1012 = vmatprep.subr.bf16.mxu1 %v1218_v0 }
 0x229   :  { %1013 = vmatpush3.bf16.msra.mxu1 %v1359_v11 }
 0x22a   :  { %1038 = vmatprep.subr.bf16.mxu1 %v1218_v0 }
 0x2df   :  { %v374_v41 = vpop.f32.mrb[4].mxu1 }
 0x2e0   :  { %v375_v42 = vadd.f32 %v374_v41, %v153_v40  ;;  %v976_v43 = vpop.f32.mrb[5].mxu1  ;;  %v172_v40 = vadd.f32 %v1441_v30, %v1408_v19 }
 0x2e1   :  { %v377_v44 = vpop.f32.mrb[6].mxu1 }
 0x2e2   :  { %1154 = vtanh.f32 %v375_v42  ;;  %v977_v45 = vpop.f32.mrb[7].mxu1 }
 0x2ec   :  { %v1474_v46 = vpop.eup %1154 }
 0x2ed   :  { %594 = vst [vmem:[%s1615_s6 + $0x18] sm:$0xff] %v1474_v46  ;;  %v381_v47 = vpack.c.bf16 %v1474_v46, %v1474_v46  ;;  %v600_v18 = vpack.c.bf16 %v1474_v46, %v1446_v38 }
 0x2ef   :  { %995 = vmatmul.mubr.bf16.vlgmr.msra.gmra.mrb[12].mxu0 %v381_v47 }
 0x2f0   :  { %1019 = vmatpush3.bf16.msra.mxu0 %v1295_v1  ;;  %1034 = vmatprep.mubr.msk.bf16.mxu0 %vm1219_vm0, %v1218_v0 }
 0x2f1   :  { %1020 = vmatprep.subr.bf16.mxu0 %v1218_v0 }
 0x2f4   :  { %1021 = vmatpush3.bf16.msra.mxu0 %v1301_v2 }
 0x2f5   :  { %1022 = vmatprep.subr.bf16.mxu0 %v1218_v0 }
 0x2f8   :  { %1023 = vmatpush3.bf16.msra.mxu0 %v1307_v3 }
 0x2f9   :  { %1024 = vmatprep.subr.bf16.mxu0 %v1218_v0 }
 0x2fc   :  { %1025 = vmatpush3.bf16.msra.mxu0 %v1322_v7 }
 0x2fd   :  { %1026 = vmatprep.subr.bf16.mxu0 %v1218_v0 }
 0x300   :  { %1027 = vmatpush3.bf16.msra.mxu0 %v1329_v8 }
 0x301   :  { %1028 = vmatprep.subr.bf16.mxu0 %v1218_v0 }
 0x304   :  { %1029 = vmatpush3.bf16.msra.mxu0 %v1341_v9 }
 0x305   :  { %1030 = vmatprep.subr.bf16.mxu0 %v1218_v0 }
 0x308   :  { %1031 = vmatpush3.bf16.msra.mxu0 %v1350_v10 }
 0x309   :  { %1032 = vmatprep.subr.bf16.mxu0 %v1218_v0 }
 0x30c   :  { %1033 = vmatpush3.bf16.msra.mxu0 %v1359_v11 }
 0x30d   :  { %1058 = vmatprep.subr.bf16.mxu0 %v1218_v0 }
 0x3c2   :  { %v416_v49 = vpop.f32.mrb[12].mxu0 }
 0x3c3   :  { %v417_v50 = vadd.f32 %v416_v49, %v156_v48  ;;  %v996_v51 = vpop.f32.mrb[13].mxu0 }
 0x3c4   :  { %v419_v52 = vpop.f32.mrb[14].mxu0 }
 0x3c5   :  { %1156 = vtanh.f32 %v417_v50  ;;  %v997_v53 = vpop.f32.mrb[15].mxu0 }
 0x3cf   :  { %v1502_v54 = vpop.eup %1156 }
 0x3d0   :  { %595 = vst [vmem:[%s1615_s6 + $0x20] sm:$0xff] %v1502_v54  ;;  %v423_v55 = vpack.c.bf16 %v1502_v54, %v1502_v54 }
 0x3d2   :  { %1015 = vmatmul.mubr.bf16.vlgmr.msra.gmra.mrb[8].mxu1 %v423_v55 }
 0x3d3   :  { %1039 = vmatpush3.bf16.msra.mxu1 %v1295_v1  ;;  %1054 = vmatprep.mubr.msk.bf16.mxu1 %vm1219_vm0, %v1218_v0 }
 0x3d4   :  { %1040 = vmatprep.subr.bf16.mxu1 %v1218_v0 }
 0x3d7   :  { %1041 = vmatpush3.bf16.msra.mxu1 %v1301_v2 }
 0x3d8   :  { %1042 = vmatprep.subr.bf16.mxu1 %v1218_v0 }
 0x3db   :  { %1043 = vmatpush3.bf16.msra.mxu1 %v1307_v3 }
 0x3dc   :  { %1044 = vmatprep.subr.bf16.mxu1 %v1218_v0 }
 0x3df   :  { %1045 = vmatpush3.bf16.msra.mxu1 %v1322_v7 }
 0x3e0   :  { %1046 = vmatprep.subr.bf16.mxu1 %v1218_v0 }
 0x3e3   :  { %1047 = vmatpush3.bf16.msra.mxu1 %v1329_v8 }
 0x3e4   :  { %1048 = vmatprep.subr.bf16.mxu1 %v1218_v0 }
 0x3e7   :  { %1049 = vmatpush3.bf16.msra.mxu1 %v1341_v9 }
 0x3e8   :  { %1050 = vmatprep.subr.bf16.mxu1 %v1218_v0 }
 0x3eb   :  { %1051 = vmatpush3.bf16.msra.mxu1 %v1350_v10 }
 0x3ec   :  { %1052 = vmatprep.subr.bf16.mxu1 %v1218_v0 }
 0x3ef   :  { %1053 = vmatpush3.bf16.msra.mxu1 %v1359_v11 }
 0x4a5   :  { %v458_v57 = vpop.f32.mrb[8].mxu1 }
 0x4a6   :  { %v459_v58 = vadd.f32 %v458_v57, %v161_v56  ;;  %v1016_v59 = vpop.f32.mrb[9].mxu1 }
 0x4a7   :  { %v461_v60 = vpop.f32.mrb[10].mxu1 }
 0x4a8   :  { %1158 = vtanh.f32 %v459_v58  ;;  %v1017_v61 = vpop.f32.mrb[11].mxu1 }
 0x4b2   :  { %v1159_v62 = vpop.eup %1158 }
 0x4b3   :  { %596 = vst [vmem:[%s1615_s6 + $0x28] sm:$0xff] %v1159_v62  ;;  %v465_v63 = vpack.c.bf16 %v1159_v62, %v1159_v62  ;;  %v601_v20 = vpack.c.bf16 %v1159_v62, %v1502_v54 }
 0x4b5   :  { %1035 = vmatmul.mubr.bf16.vlgmr.msra.gmra.mrb[16].mxu0 %v465_v63 }
 0x4b6   :  { %1059 = vmatpush3.bf16.msra.mxu0 %v1295_v1  ;;  %1074 = vmatprep.mubr.msk.bf16.mxu0 %vm1219_vm0, %v1218_v0  ;;  %v1142_v1 = vld [vmem:[#allocation4] sm:$0xff]  }
 0x4b7   :  { %1060 = vmatprep.subr.bf16.mxu0 %v1218_v0  ;;  %1078 = vmatprep.subr.bf16.mxu1 %v1142_v1 }
 0x4ba   :  { %1061 = vmatpush3.bf16.msra.mxu0 %v1301_v2  ;;  %v164_v2 = vadd.f32 %v1408_v19, %v1443_v31 }
 0x4bb   :  { %1062 = vmatprep.subr.bf16.mxu0 %v1218_v0 }
 0x4be   :  { %1063 = vmatpush3.bf16.msra.mxu0 %v1307_v3 }
 0x4bf   :  { %1064 = vmatprep.subr.bf16.mxu0 %v1218_v0 }
 0x4c2   :  { %1065 = vmatpush3.bf16.msra.mxu0 %v1322_v7 }
 0x4c3   :  { %1066 = vmatprep.subr.bf16.mxu0 %v1218_v0 }
 0x4c6   :  { %1067 = vmatpush3.bf16.msra.mxu0 %v1329_v8 }
 0x4c7   :  { %1068 = vmatprep.subr.bf16.mxu0 %v1218_v0 }
 0x4ca   :  { %1069 = vmatpush3.bf16.msra.mxu0 %v1341_v9 }
 0x4cb   :  { %1070 = vmatprep.subr.bf16.mxu0 %v1218_v0 }
 0x4ce   :  { %1071 = vmatpush3.bf16.msra.mxu0 %v1350_v10  ;;  %v1143_v10 = vld [vmem:[#allocation4 + $0x8] sm:$0xff]  }
 0x4cf   :  { %1072 = vmatprep.subr.bf16.mxu0 %v1218_v0 }
 0x4d2   :  { %1073 = vmatpush3.bf16.msra.mxu0 %v1359_v11  ;;  %v599_v11 = vpack.c.bf16 %v1411_v26, %v1218_v0 }
 0x4d3   :  { %1102 = vmatprep.subr.bf16.mxu0 %v1218_v0 }
 0x588   :  { %v500_v3 = vpop.f32.mrb[16].mxu0 }
 0x589   :  { %v501_v4 = vadd.f32 %v500_v3, %v164_v2  ;;  %v1036_v5 = vpop.f32.mrb[17].mxu0 }
 0x58a   :  { %v503_v6 = vpop.f32.mrb[18].mxu0 }
 0x58b   :  { %1160 = vtanh.f32 %v501_v4  ;;  %v1037_v7 = vpop.f32.mrb[19].mxu0 }
 0x595   :  { %v1161_v8 = vpop.eup %1160 }
 0x596   :  { %597 = vst [vmem:[%s1615_s6 + $0x30] sm:$0xff] %v1161_v8  ;;  %v507_v9 = vpack.c.bf16 %v1161_v8, %v1161_v8 }
 0x598   :  { %1055 = vmatmul.mubr.bf16.vlgmr.msra.gmra.mrb[12].mxu1 %v507_v9 }
 0x599   :  { %1079 = vmatpush3.bf16.msra.mxu1 %v1142_v1  ;;  %1094 = vmatprep.mubr.bf16.mxu1 %v599_v11 }
 0x59a   :  { %1080 = vmatprep.subr.bf16.mxu1 %v1143_v10 }
 0x59d   :  { %1081 = vmatpush3.bf16.msra.mxu1 %v1143_v10 }
 0x59e   :  { %1082 = vmatprep.subr.bf16.mxu1 %v1144_v12 }
 0x5a1   :  { %1083 = vmatpush3.bf16.msra.mxu1 %v1144_v12 }
 0x5a2   :  { %1084 = vmatprep.subr.bf16.mxu1 %v1145_v13 }
 0x5a5   :  { %1085 = vmatpush3.bf16.msra.mxu1 %v1145_v13 }
 0x5a6   :  { %1086 = vmatprep.subr.bf16.mxu1 %v1146_v14 }
 0x5a9   :  { %1087 = vmatpush3.bf16.msra.mxu1 %v1146_v14 }
 0x5aa   :  { %1088 = vmatprep.subr.bf16.mxu1 %v1147_v15 }
 0x5ad   :  { %1089 = vmatpush3.bf16.msra.mxu1 %v1147_v15 }
 0x5ae   :  { %1090 = vmatprep.subr.bf16.mxu1 %v1148_v16 }
 0x5b1   :  { %1091 = vmatpush3.bf16.msra.mxu1 %v1148_v16 }
 0x5b2   :  { %1092 = vmatprep.subr.bf16.mxu1 %v1149_v17 }
 0x5b5   :  { %1093 = vmatpush3.bf16.msra.mxu1 %v1149_v17 }
 0x5b8   :  { %1095 = vmatmul.mubr.bf16.vlgmr.msra.gmra.mrb[16].mxu1 %v600_v18 }
 0x5b9   :  { %1098 = vmatprep.mubr.bf16.mxu1 %v601_v20 }
 0x66b   :  { %v542_v22 = vpop.f32.mrb[12].mxu1 }
 0x66c   :  { %v543_v23 = vadd.f32 %v542_v22, %v169_v21  ;;  %v1056_v24 = vpop.f32.mrb[13].mxu1 }
 0x66d   :  { %v545_v25 = vpop.f32.mrb[14].mxu1 }
 0x66e   :  { %1162 = vtanh.f32 %v543_v23  ;;  %v1057_v26 = vpop.f32.mrb[15].mxu1 }
 0x678   :  { %v1163_v27 = vpop.eup %1162 }
 0x679   :  { %598 = vst [vmem:[%s1615_s6 + $0x38] sm:$0xff] %v1163_v27  ;;  %v549_v29 = vpack.c.bf16 %v1163_v27, %v1163_v27  ;;  %v602_v31 = vpack.c.bf16 %v1163_v27, %v1161_v8 }
 0x67b   :  { %1075 = vmatmul.mubr.bf16.vlgmr.msra.gmra.mrb[20].mxu0 %v549_v29  ;;  %1099 = vmatmul.mubr.bf16.gmra.mrb[20].mxu1 %v602_v31 }
 0x67c   :  { %1103 = vmatpush3.bf16.msra.mxu0 %v1142_v1  ;;  %1118 = vmatprep.mubr.msk.bf16.mxu0 %vm1219_vm0, %v1218_v0 }
 0x67d   :  { %1104 = vmatprep.subr.bf16.mxu0 %v1218_v0 }
 0x680   :  { %1105 = vmatpush3.bf16.msra.mxu0 %v1143_v10 }
 0x681   :  { %1106 = vmatprep.subr.bf16.mxu0 %v1218_v0 }
 0x684   :  { %1107 = vmatpush3.bf16.msra.mxu0 %v1144_v12 }
 0x685   :  { %1108 = vmatprep.subr.bf16.mxu0 %v1218_v0 }
 0x688   :  { %1109 = vmatpush3.bf16.msra.mxu0 %v1145_v13 }
 0x689   :  { %1110 = vmatprep.subr.bf16.mxu0 %v1218_v0 }
 0x68b   :  { %v1096_v32 = vpop.f32.mrb[16].mxu1 }
 0x68c   :  { %v700_v33 = vadd.f32 %v1096_v32, %v801_v28  ;;  %v691_v34 = vpop.f32.mrb[17].mxu1  ;;  %1111 = vmatpush3.bf16.msra.mxu0 %v1146_v14 }
 0x68d   :  { %v692_v35 = vadd.f32 %v801_v28, %v691_v34  ;;  %v1097_v36 = vpop.f32.mrb[18].mxu1  ;;  %1112 = vmatprep.subr.bf16.mxu0 %v1218_v0 }
 0x68e   :  { %724 = vst [vmem:[%s1616_s7 + $0x10] sm:$0xff] %v700_v33  ;;  %v703_v37 = vadd.f32 %v1097_v36, %v801_v28  ;;  %v694_v38 = vpop.f32.mrb[19].mxu1 }
 0x68f   :  { %722 = vst [vmem:[%s1616_s7] sm:$0xff] %v692_v35  ;;  %v695_v39 = vadd.f32 %v801_v28, %v694_v38 }
 0x690   :  { %725 = vst [vmem:[%s1616_s7 + $0x18] sm:$0xff] %v703_v37  ;;  %1113 = vmatpush3.bf16.msra.mxu0 %v1147_v15 }
 0x691   :  { %723 = vst [vmem:[%s1616_s7 + $0x8] sm:$0xff] %v695_v39  ;;  %1114 = vmatprep.subr.bf16.mxu0 %v1218_v0 }
 0x694   :  { %1115 = vmatpush3.bf16.msra.mxu0 %v1148_v16 }
 0x695   :  { %1116 = vmatprep.subr.bf16.mxu0 %v1218_v0 }
 0x698   :  { %1117 = vmatpush3.bf16.msra.mxu0 %v1149_v17 }
 0x74e   :  { %v584_v41 = vpop.f32.mrb[20].mxu0  ;;  %v1100_v42 = vpop.f32.mrb[20].mxu1 }
 0x74f   :  { %v585_v43 = vadd.f32 %v584_v41, %v172_v40  ;;  %v716_v44 = vadd.f32 %v1100_v42, %v801_v28  ;;  %v1076_v45 = vpop.f32.mrb[21].mxu0  ;;  %v707_v46 = vpop.f32.mrb[21].mxu1 }
 0x750   :  { %v708_v47 = vadd.f32 %v801_v28, %v707_v46  ;;  %v587_v48 = vpop.f32.mrb[22].mxu0  ;;  %v1101_v49 = vpop.f32.mrb[22].mxu1 }
 0x751   :  { %1164 = vtanh.f32 %v585_v43  ;;  %728 = vst [vmem:[%s1616_s7 + $0x30] sm:$0xff] %v716_v44  ;;  %v719_v50 = vadd.f32 %v1101_v49, %v801_v28  ;;  %v1077_v0 = vpop.f32.mrb[23].mxu0  ;;  %v710_v51 = vpop.f32.mrb[23].mxu1 }
 0x752   :  { %726 = vst [vmem:[%s1616_s7 + $0x20] sm:$0xff] %v708_v47  ;;  %v711_v19 = vadd.f32 %v801_v28, %v710_v51 }
 0x753   :  { %729 = vst [vmem:[%s1616_s7 + $0x38] sm:$0xff] %v719_v50 }
 0x754   :  { %727 = vst [vmem:[%s1616_s7 + $0x28] sm:$0xff] %v711_v19 }
 0x75b   :  { %v1165_v30 = vpop.eup %1164 }
 0x75c   :  { %730 = vst [vmem:[%s1615_s6 + $0x40] sm:$0xff] %v1165_v30  ;;  %v731_v52 = vpack.c.bf16 %v1165_v30, %v1165_v30 }
 0x75e   :  { %1119 = vmatmul.mubr.bf16.vlgmr.msra.gmra.mrb[24].mxu0 %v731_v52 }
 0x831   :  { %v766_v53 = vpop.f32.mrb[24].mxu0 }
 0x832   :  { %v767_v54 = vadd.f32 %v801_v28, %v766_v53  ;;  %v1120_v55 = vpop.f32.mrb[25].mxu0 }
 0x833   :  { %v769_v56 = vpop.f32.mrb[26].mxu0 }
 0x834   :  { %772 = vst [vmem:[%s1616_s7 + $0x40] sm:$0xff] %v767_v54  ;;  %v1121_v57 = vpop.f32.mrb[27].mxu0 }
 0x835   :  { %781 = vsyncpa [#allocation3], 1 }
 0x836   :  { %782 = vsyncpa [#allocation5], 1 }

</bundles_post_ra>
